<compile_context>
chip_gen: v7x
topology: tpu7x:2x2x1
jax: 0.10.0
libtpu: 0.0.40
codegen_flags: <defaults>
</compile_context>

<pallas_src>
import functools

import jax
import jax.numpy as jnp
import numpy as np
from jax.experimental import pallas as pl
from jax.experimental.pallas import tpu as pltpu

_LANE = 128
_VMEM_LIMIT = 32 * 1024 * 1024  # safe scoped-VMEM budget on v5e/v6e/v7x


# ----------------------------------------------------------------------------
# Tiled Pallas linear kernel:  out = act(x @ w + b)
# M is tiled ("parallel" axis, megacore-shardable); weights stay resident.
# ----------------------------------------------------------------------------
def _linear_kernel(x_ref, w_ref, b_ref, o_ref, *, relu):
    y = jnp.dot(x_ref[...], w_ref[...], preferred_element_type=jnp.float32)
    y = y + b_ref[...]
    if relu:
        y = jnp.maximum(y, 0.0)
    o_ref[...] = y.astype(o_ref.dtype)


def _pick_tile_m(m, cap=512):
    # largest tile <= cap that divides M and is sublane-aligned; else whole M.
    for cand in (cap, 256, 128, 64, 32, 16, 8):
        if cand <= m and m % cand == 0:
            return cand
    return m


def pallas_linear(x, w, b, relu=False, tile_m_cap=512):
    m, k = x.shape
    k2, n = w.shape
    assert k == k2
    tm = _pick_tile_m(m, tile_m_cap)
    grid = (m // tm,)
    return pl.pallas_call(
        functools.partial(_linear_kernel, relu=relu),
        out_shape=jax.ShapeDtypeStruct((m, n), jnp.float32),
        grid=grid,
        in_specs=[
            pl.BlockSpec((tm, k), lambda i: (i, 0)),   # activation tile
            pl.BlockSpec((k, n), lambda i: (0, 0)),    # weight (resident)
            pl.BlockSpec((1, n), lambda i: (0, 0)),    # bias (resident)
        ],
        out_specs=pl.BlockSpec((tm, n), lambda i: (i, 0)),
        compiler_params=pltpu.CompilerParams(
            dimension_semantics=("parallel",),
            vmem_limit_bytes=_VMEM_LIMIT),
    )(x, w, b.reshape(1, n))


# ----------------------------------------------------------------------------
# LSTM recurrence + final fc in ONE kernel invocation (no time grid).
# gates_x (= x @ W_ih + b, precomputed) is fully VMEM-resident; in-kernel
# fori_loop carries (h, c) in registers; only h @ W_hh runs per step.
# ----------------------------------------------------------------------------
def _lstm_rec_kernel(gx_ref, whh_ref, wfc_ref, bfc_ref, out_ref):
    T, B, _ = gx_ref.shape
    Hp = whh_ref.shape[0]

    whh = whh_ref[...]                    # hoisted: resident weight, read once
    h0 = jnp.zeros((B, Hp), jnp.float32)
    c0 = jnp.zeros((B, Hp), jnp.float32)

    def step(t, carry):
        h, c = carry
        gates = gx_ref[t] + jnp.dot(h, whh, preferred_element_type=jnp.float32)
        # lane-aligned gate slices (Hp is a multiple of 128); PyTorch order i,f,g,o
        i_g = jax.nn.sigmoid(gates[:, 0 * Hp:1 * Hp])
        f_g = jax.nn.sigmoid(gates[:, 1 * Hp:2 * Hp])
        g_g = jnp.tanh(gates[:, 2 * Hp:3 * Hp])
        o_g = jax.nn.sigmoid(gates[:, 3 * Hp:4 * Hp])
        c_new = f_g * c + i_g * g_g
        h_new = o_g * jnp.tanh(c_new)
        return (h_new, c_new)

    h_f, _ = jax.lax.fori_loop(0, T, step, (h0, c0), unroll=True)

    # pred = fc(dropout(h_n[-1])); dropout(p=0) == identity.
    # Output is lane-padded to 128 cols (zero weight cols) -> unmasked stores.
    pred = jnp.dot(h_f, wfc_ref[...], preferred_element_type=jnp.float32)
    out_ref[...] = (pred + bfc_ref[...]).astype(out_ref.dtype)


def pallas_lstm_rec(gates_x, w_hh_p, w_fc_p, b_fc_p):
    T, B, G = gates_x.shape
    out_pad = w_fc_p.shape[1]
    return pl.pallas_call(
        _lstm_rec_kernel,
        out_shape=jax.ShapeDtypeStruct((B, out_pad), jnp.float32),
        in_specs=[pl.BlockSpec(memory_space=pltpu.MemorySpace.VMEM)] * 4,
        out_specs=pl.BlockSpec(memory_space=pltpu.MemorySpace.VMEM),
        compiler_params=pltpu.CompilerParams(vmem_limit_bytes=_VMEM_LIMIT),
    )(gates_x, w_hh_p, w_fc_p, b_fc_p)


# ----------------------------------------------------------------------------
# Glue: im2col (3x3, pad=1, stride=1) for the conv-as-matmul.
# ----------------------------------------------------------------------------
def im2col_3x3(img):
    # img: [N, C, H, W]  ->  [N*H*W, C*9]   (col order: c-major, then kh, kw)
    n, c, h, w = img.shape
    p = jnp.pad(img, ((0, 0), (0, 0), (1, 1), (1, 1)))
    taps = []
    for di in range(3):
        for dj in range(3):
            taps.append(p[:, :, di:di + h, dj:dj + w])
    patches = jnp.stack(taps, axis=2)                    # [N, C, 9, H, W]
    patches = patches.transpose(0, 3, 4, 1, 2)           # [N, H, W, C, 9]
    return patches.reshape(n * h * w, c * 9)


# ----------------------------------------------------------------------------
# Parameter prep for the Pallas path: fold the NCHW permutation into w_cnnfc
# and pad LSTM weights so each gate occupies a full 128-lane block.
# ----------------------------------------------------------------------------
def prepare_pallas_params(params, cfg):
    LAT, LON = cfg["lat"], cfg["lon"]
    D, H = cfg["input_size"], cfg["hidden_size"]
    F = cfg["conv_filters"]
    P = LAT * LON
    Hp = ((H + _LANE - 1) // _LANE) * _LANE
    out_pad = _LANE

    # fold NHWC(pos-major) -> NCHW(channel-major) flatten into the fc weight
    w_cnnfc_perm = (params["w_cnnfc"].reshape(F, P, -1)
                    .transpose(1, 0, 2)
                    .reshape(P * F, -1))

    def pad_gates(w, rows_out):
        rows = w.shape[0]
        out = jnp.zeros((rows_out, 4 * Hp), jnp.float32)
        for k in range(4):
            out = out.at[:rows, k * Hp:k * Hp + H].set(w[:, k * H:(k + 1) * H])
        return out

    w_ih_p = pad_gates(params["w_ih"], D)
    w_hh_p = pad_gates(params["w_hh"], Hp)
    b_lstm_p = jnp.zeros((4 * Hp,), jnp.float32)
    for k in range(4):
        b_lstm_p = b_lstm_p.at[k * Hp:k * Hp + H].set(
            params["b_lstm"][k * H:(k + 1) * H])
    w_fc_p = jnp.zeros((Hp, out_pad), jnp.float32).at[:H, :1].set(params["w_fc"])
    b_fc_p = jnp.zeros((1, out_pad), jnp.float32).at[0, 0].set(params["b_fc"][0])

    pp = dict(params)
    pp.update(w_cnnfc_perm=w_cnnfc_perm, w_ih_p=w_ih_p, w_hh_p=w_hh_p,
              b_lstm_p=b_lstm_p, w_fc_p=w_fc_p, b_fc_p=b_fc_p)
    return pp


# ----------------------------------------------------------------------------
# Full forward (mirrors CNNLSTM.forward) — Pallas path
# ----------------------------------------------------------------------------
def cnn_lstm_forward_pallas(x, pp, cfg):
    B, T, _ = x.shape
    C, LAT, LON = cfg["num_channels"], cfg["lat"], cfg["lon"]
    img_feats = C * LAT * LON
    F = pp["w_conv"].shape[1]

    image = x[:, :, :img_feats].reshape(B * T, C, LAT, LON)    # c_in, NCHW
    a_in = x[:, :, img_feats:]                                 # static attributes

    # --- CNN: conv3x3(pad=1)+ReLU as im2col matmul, fc with folded permutation ---
    patches = im2col_3x3(image)                                # (B*T*LAT*LON, C*9)
    conv = pallas_linear(patches, pp["w_conv"], pp["b_conv"], relu=True)
    flat = conv.reshape(B * T, LAT * LON * F)                  # contiguous view, no transpose
    cnn_out = pallas_linear(flat, pp["w_cnnfc_perm"], pp["b_cnnfc"])
    cnn_out = cnn_out.reshape(B, T, -1)

    # --- concat CNN features with attributes ---
    r_in = jnp.concatenate([cnn_out, a_in], axis=2)            # (B, T, D)
    x_seq = jnp.transpose(r_in, (1, 0, 2))                     # time-major (T, B, D)
    Tn, Bn, D = x_seq.shape
    Hp = pp["w_hh_p"].shape[0]

    # --- hoisted input projection: one big MXU matmul over all T*B rows ---
    gx = pallas_linear(x_seq.reshape(Tn * Bn, D), pp["w_ih_p"], pp["b_lstm_p"])
    gx = gx.reshape(Tn, Bn, 4 * Hp)

    # --- recurrence + final fc, single kernel, in-kernel time loop ---
    out_pad = pallas_lstm_rec(gx, pp["w_hh_p"], pp["w_fc_p"], pp["b_fc_p"])
    return out_pad[:, :1]


# ----------------------------------------------------------------------------
# Pure-JAX reference (original, unpadded / unpermuted parameters)
# ----------------------------------------------------------------------------
def cnn_lstm_forward_ref(x, params, cfg):
    B, T, _ = x.shape
    C, LAT, LON = cfg["num_channels"], cfg["lat"], cfg["lon"]
    img_feats = C * LAT * LON

    image = x[:, :, :img_feats].reshape(B * T, C, LAT, LON)
    a_in = x[:, :, img_feats:]

    patches = im2col_3x3(image)
    conv = jnp.maximum(patches @ params["w_conv"] + params["b_conv"][None, :], 0.0)
    F = params["w_conv"].shape[1]
    conv = conv.reshape(B * T, LAT, LON, F).transpose(0, 3, 1, 2)   # NCHW
    flat = conv.reshape(B * T, F * LAT * LON)
    cnn_out = flat @ params["w_cnnfc"] + params["b_cnnfc"][None, :]
    cnn_out = cnn_out.reshape(B, T, -1)

    r_in = jnp.concatenate([cnn_out, a_in], axis=2)
    x_seq = jnp.transpose(r_in, (1, 0, 2))

    H = params["w_hh"].shape[0]
    h = jnp.zeros((B, H), jnp.float32)
    c = jnp.zeros((B, H), jnp.float32)
    for t in range(x_seq.shape[0]):
        gates = x_seq[t] @ params["w_ih"] + h @ params["w_hh"] + params["b_lstm"][None, :]
        i_g = jax.nn.sigmoid(gates[:, 0 * H:1 * H])
        f_g = jax.nn.sigmoid(gates[:, 1 * H:2 * H])
        g_g = jnp.tanh(gates[:, 2 * H:3 * H])
        o_g = jax.nn.sigmoid(gates[:, 3 * H:4 * H])
        c = f_g * c + i_g * g_g
        h = o_g * jnp.tanh(c)
    return h @ params["w_fc"] + params["b_fc"][None, :]


# ----------------------------------------------------------------------------
# Deterministic parameter init (shapes implied by the module __init__)
# ----------------------------------------------------------------------------
def init_params(key, cfg):
    C, LAT, LON = cfg["num_channels"], cfg["lat"], cfg["lon"]
    D, H = cfg["input_size"], cfg["hidden_size"]
    NA, F = cfg["num_attributes"], cfg["conv_filters"]
    cnn_out_size = D - NA

    ks = jax.random.split(key, 10)

    def u(k, shape, scale=0.1):
        return (jax.random.uniform(k, shape, jnp.float32) - 0.5) * (2.0 * scale)

    return {
        # conv weight stored as matmul matrix [C*9, F] (cols of im2col x filters)
        "w_conv": u(ks[0], (C * 9, F)),
        "b_conv": u(ks[1], (F,)),
        "w_cnnfc": u(ks[2], (F * LAT * LON, cnn_out_size)),
        "b_cnnfc": u(ks[3], (cnn_out_size,)),
        # LSTM weights stored transposed: [D, 4H], [H, 4H]; gate order i,f,g,o
        "w_ih": u(ks[4], (D, 4 * H)),
        "w_hh": u(ks[5], (H, 4 * H)),
        "b_lstm": u(ks[6], (4 * H,)),     # b_ih + b_hh folded
        "w_fc": u(ks[7], (H, 1)),
        "b_fc": u(ks[8], (1,)),
    }


if __name__ == "__main__":
    cfg = dict(
        lat=4, lon=4, num_channels=2, num_attributes=3,
        input_size=16, hidden_size=32, conv_filters=8,
        batch=2, seq=8,
    )
    num_features = cfg["num_channels"] * cfg["lat"] * cfg["lon"] + cfg["num_attributes"]  # 35

    key = jax.random.PRNGKey(0)
    k_x, k_p = jax.random.split(key)
    x = jax.random.normal(k_x, (cfg["batch"], cfg["seq"], num_features), jnp.float32)
    params = init_params(k_p, cfg)
    pp = prepare_pallas_params(params, cfg)

    pred = cnn_lstm_forward_pallas(x, pp, cfg)
    pred = jax.block_until_ready(pred)

    ref = cnn_lstm_forward_ref(x, params, cfg)
    ref = jax.block_until_ready(ref)

    assert pred.shape == (cfg["batch"], 1), pred.shape
    np.testing.assert_allclose(np.asarray(pred), np.asarray(ref), rtol=1e-2, atol=1e-2)

    print("KERNEL_OK")
</pallas_src>

<mosaic_0001>
module attributes {stable_mosaic.version = 11 : i64} {
  func.func @_linear_kernel(%arg0: i32, %arg1: memref<256x18xf32, #tpu.memory_space<vmem>>, %arg2: memref<18x8xf32, #tpu.memory_space<vmem>>, %arg3: memref<1x8xf32, #tpu.memory_space<vmem>>, %arg4: memref<256x8xf32, #tpu.memory_space<vmem>>) attributes {dimension_semantics = [#tpu.dimension_semantics<parallel>], iteration_bounds = array<i64: 1>, scalar_prefetch = 0 : i64, scratch_operands = 0 : i64, tpu.core_type = #tpu.core_type<tc>, window_params = [{transform_indices = @transform_0, window_bounds = array<i64: 256, 18>}, {pipeline_mode = #tpu.pipeline_mode<synchronous>, transform_indices = @transform_1, window_bounds = array<i64: 18, 8>}, {pipeline_mode = #tpu.pipeline_mode<synchronous>, transform_indices = @transform_2, window_bounds = array<i64: 1, 8>}, {transform_indices = @transform_3, window_bounds = array<i64: 256, 8>}]} {
    %c0 = arith.constant 0 : index
    %c0_0 = arith.constant 0 : index
    %0 = vector.load %arg1[%c0, %c0_0] : memref<256x18xf32, #tpu.memory_space<vmem>>, vector<256x18xf32>
    %c0_1 = arith.constant 0 : index
    %c0_2 = arith.constant 0 : index
    %1 = vector.load %arg2[%c0_1, %c0_2] : memref<18x8xf32, #tpu.memory_space<vmem>>, vector<18x8xf32>
    %cst = arith.constant dense<0.000000e+00> : vector<256x8xf32>
    %2 = tpu.matmul %0, %1, %cst {dimension_numbers = #tpu.dot_dimension_numbers<[1], [0], [0], [1], [0, 0, 1, 1], [], []>} : vector<256x18xf32>, vector<18x8xf32>, vector<256x8xf32> -> vector<256x8xf32>
    %c0_3 = arith.constant 0 : index
    %c0_4 = arith.constant 0 : index
    %3 = vector.load %arg3[%c0_3, %c0_4] : memref<1x8xf32, #tpu.memory_space<vmem>>, vector<1x8xf32>
    %4 = vector.broadcast %3 : vector<1x8xf32> to vector<256x8xf32>
    %5 = arith.addf %2, %4 : vector<256x8xf32>
    %cst_5 = arith.constant 0.000000e+00 : f32
    %6 = vector.broadcast %cst_5 : f32 to vector<256x8xf32>
    %7 = arith.maximumf %5, %6 : vector<256x8xf32>
    %c0_6 = arith.constant 0 : index
    %c0_7 = arith.constant 0 : index
    %8 = vector.load %arg4[%c0_6, %c0_7] : memref<256x8xf32, #tpu.memory_space<vmem>>, vector<256x8xf32>
    tpu.vector_store %arg4[%c0_6, %c0_7], %7 {strides = array<i32>} : memref<256x8xf32, #tpu.memory_space<vmem>>, vector<256x8xf32>,
    return
  }
  func.func @transform_0(%arg0: i32) -> (i32, i32) {
    %c0_i32 = arith.constant 0 : i32
    %c0_i32_0 = arith.constant 0 : i32
    return %arg0, %c0_i32 : i32, i32
  }
  func.func @transform_1(%arg0: i32) -> (i32, i32) {
    %c0_i32 = arith.constant 0 : i32
    %c0_i32_0 = arith.constant 0 : i32
    %c0_i32_1 = arith.constant 0 : i32
    return %c0_i32, %c0_i32_0 : i32, i32
  }
  func.func @transform_2(%arg0: i32) -> (i32, i32) {
    %c0_i32 = arith.constant 0 : i32
    %c0_i32_0 = arith.constant 0 : i32
    %c0_i32_1 = arith.constant 0 : i32
    return %c0_i32, %c0_i32_0 : i32, i32
  }
  func.func @transform_3(%arg0: i32) -> (i32, i32) {
    %c0_i32 = arith.constant 0 : i32
    %c0_i32_0 = arith.constant 0 : i32
    return %arg0, %c0_i32 : i32, i32
  }
}

</mosaic_0001>

<bundles_post_ra>
// kernel: tpu_custom_call.1
= control target key start
LH: loop header
LB: loop body
LE: loop exit
PB: predicated region body
PF: predicated region fallthrough
CT: control target
= control target key end

     0   :  { %vm56_vm0 = vcmask 146432   ;;  %vm153_vm1 = vcmask 1041408   ;;  %vm414_vm2 = vcmask 64512   ;;  %s904_s1 = inlined_call_operand.vmem [shape: f32[18,8], index: 1, kind: input, shape index: {}]   ;;  %s905_s0 = inlined_call_operand.vmem [shape: f32[256,18], index: 0, kind: input, shape index: {}]   ;;  %s906_s2 = inlined_call_operand.vmem [shape: f32[1,8], index: 2, kind: input, shape index: {}]   ;;  %s907_s3 = inlined_call_operand.vmem [shape: f32[256,8], index: 3, kind: output, shape index: {}]  }
   0x1   :  { %v46_v0 = vld [vmem:[%s904_s1] sm:$0xff]  ;;  %v47_v1 = vld [vmem:[%s904_s1 + $0x8] sm:$0xff]  ;;  %v48_v5 = vld [vmem:[%s904_s1 + $0x10] sm:$0x3] }
   0x2   :  { %v574_v2 = vpack.c.bf16 %v47_v1, %v46_v0  ;;  %v14_v3 = vld [vmem:[%s905_s0] sm:$0xff]  ;;  %v15_v6 = vld [vmem:[%s905_s0 + $0x8] sm:$0xff]  ;;  %v16_v8 = vld [vmem:[%s905_s0 + $0x10] sm:$0xff] }
   0x3   :  { %v30_v4 = vld [vmem:[%s905_s0 + $0x80] sm:$0xff]  ;;  %526 = vmatprep.mubr.msk.f32.mxu0 %vm56_vm0, %v14_v3  ;;  %v31_v7 = vld [vmem:[%s905_s0 + $0x88] sm:$0xff]  ;;  %v32_v9 = vld [vmem:[%s905_s0 + $0x90] sm:$0xff] }
   0x4   :  { %550 = vmatprep.mubr.msk.f32.mxu1 %vm56_vm0, %v30_v4  ;;  %575 = vmatprep.subr.bf16.mxu0 %v574_v2  ;;  %v17_v10 = vld [vmem:[%s905_s0 + $0x18] sm:$0xff]  ;;  %v18_v12 = vld [vmem:[%s905_s0 + $0x20] sm:$0xff]  ;;  %v19_v14 = vld [vmem:[%s905_s0 + $0x28] sm:$0xff] }
   0x5   :  { %578 = vmatprep.subr.bf16.mxu1 %v574_v2  ;;  %577 = vmatpush3.bf16.msra.mxu0 %v574_v2  ;;  %v33_v11 = vld [vmem:[%s905_s0 + $0x98] sm:$0xff]  ;;  %v34_v13 = vld [vmem:[%s905_s0 + $0xa0] sm:$0xff]  ;;  %v35_v15 = vld [vmem:[%s905_s0 + $0xa8] sm:$0xff] }
   0x6   :  { %580 = vmatpush3.bf16.msra.mxu1 %v574_v2  ;;  %524 = vmatprep.subr.msk.mxu0 %vm153_vm1, %v48_v5  ;;  %v20_v16 = vld [vmem:[%s905_s0 + $0x30] sm:$0xff]  ;;  %v21_v18 = vld [vmem:[%s905_s0 + $0x38] sm:$0xff]  ;;  %v22_v20 = vld [vmem:[%s905_s0 + $0x40] sm:$0xff] }
   0x7   :  { %579 = vmatprep.subr.msk.mxu1 %vm153_vm1, %v48_v5  ;;  %v36_v17 = vld [vmem:[%s905_s0 + $0xb0] sm:$0xff]  ;;  %v37_v19 = vld [vmem:[%s905_s0 + $0xb8] sm:$0xff]  ;;  %v38_v21 = vld [vmem:[%s905_s0 + $0xc0] sm:$0xff] }
   0x8   :  { %v23_v22 = vld [vmem:[%s905_s0 + $0x48] sm:$0xff]  ;;  %v24_v24 = vld [vmem:[%s905_s0 + $0x50] sm:$0xff]  ;;  %v25_v26 = vld [vmem:[%s905_s0 + $0x58] sm:$0xff] }
   0x9   :  { %525 = vmatpush3.msk.msra.mxu0 %vm153_vm1, %v48_v5  ;;  %v39_v23 = vld [vmem:[%s905_s0 + $0xc8] sm:$0xff]  ;;  %v40_v25 = vld [vmem:[%s905_s0 + $0xd0] sm:$0xff]  ;;  %v41_v27 = vld [vmem:[%s905_s0 + $0xd8] sm:$0xff] }
   0xa   :  { %581 = vmatpush3.msk.msra.mxu1 %vm153_vm1, %v48_v5  ;;  %527 = vmatmul.mubr.msk.f32.vlgmr.msra.gmra.mrb[0].mxu0 %vm56_vm0, %v15_v6  ;;  %v26_v28 = vld [vmem:[%s905_s0 + $0x60] sm:$0xff]  ;;  %v27_v30 = vld [vmem:[%s905_s0 + $0x68] sm:$0xff]  ;;  %v28_v32 = vld [vmem:[%s905_s0 + $0x70] sm:$0xff] }
   0xb   :  { %551 = vmatmul.mubr.msk.f32.vlgmr.msra.gmra.mrb[0].mxu1 %vm56_vm0, %v31_v7  ;;  %529 = vmatprep.mubr.msk.f32.mxu0 %vm56_vm0, %v16_v8  ;;  %v42_v29 = vld [vmem:[%s905_s0 + $0xe0] sm:$0xff]  ;;  %v43_v31 = vld [vmem:[%s905_s0 + $0xe8] sm:$0xff]  ;;  %v44_v33 = vld [vmem:[%s905_s0 + $0xf0] sm:$0xff] }
   0xc   :  { %553 = vmatprep.mubr.msk.f32.mxu1 %vm56_vm0, %v32_v9  ;;  %v29_v34 = vld [vmem:[%s905_s0 + $0x78] sm:$0xff]  ;;  %v742_v36 = vld [vmem:[%s906_s2] ss:$0 sm:$0xff] }
   0xd   :  { %v45_v35 = vld [vmem:[%s905_s0 + $0xf8] sm:$0xff] }
   0xe   :  { %530 = vmatmul.mubr.msk.f32.gmra.mrb[2].mxu0 %vm56_vm0, %v17_v10 }
   0xf   :  { %554 = vmatmul.mubr.msk.f32.gmra.mrb[2].mxu1 %vm56_vm0, %v33_v11  ;;  %532 = vmatprep.mubr.msk.f32.mxu0 %vm56_vm0, %v18_v12 }
  0x10   :  { %556 = vmatprep.mubr.msk.f32.mxu1 %vm56_vm0, %v34_v13 }
  0x12   :  { %533 = vmatmul.mubr.msk.f32.gmra.mrb[4].mxu0 %vm56_vm0, %v19_v14 }
  0x13   :  { %557 = vmatmul.mubr.msk.f32.gmra.mrb[4].mxu1 %vm56_vm0, %v35_v15  ;;  %535 = vmatprep.mubr.msk.f32.mxu0 %vm56_vm0, %v20_v16 }
  0x14   :  { %559 = vmatprep.mubr.msk.f32.mxu1 %vm56_vm0, %v36_v17 }
  0x16   :  { %536 = vmatmul.mubr.msk.f32.gmra.mrb[6].mxu0 %vm56_vm0, %v21_v18 }
  0x17   :  { %560 = vmatmul.mubr.msk.f32.gmra.mrb[6].mxu1 %vm56_vm0, %v37_v19  ;;  %538 = vmatprep.mubr.msk.f32.mxu0 %vm56_vm0, %v22_v20 }
  0x18   :  { %562 = vmatprep.mubr.msk.f32.mxu1 %vm56_vm0, %v38_v21 }
  0x1a   :  { %539 = vmatmul.mubr.msk.f32.gmra.mrb[8].mxu0 %vm56_vm0, %v23_v22 }
  0x1b   :  { %563 = vmatmul.mubr.msk.f32.gmra.mrb[8].mxu1 %vm56_vm0, %v39_v23  ;;  %541 = vmatprep.mubr.msk.f32.mxu0 %vm56_vm0, %v24_v24 }
  0x1c   :  { %565 = vmatprep.mubr.msk.f32.mxu1 %vm56_vm0, %v40_v25 }
  0x1e   :  { %542 = vmatmul.mubr.msk.f32.gmra.mrb[10].mxu0 %vm56_vm0, %v25_v26 }
  0x1f   :  { %566 = vmatmul.mubr.msk.f32.gmra.mrb[10].mxu1 %vm56_vm0, %v41_v27  ;;  %544 = vmatprep.mubr.msk.f32.mxu0 %vm56_vm0, %v26_v28 }
  0x20   :  { %568 = vmatprep.mubr.msk.f32.mxu1 %vm56_vm0, %v42_v29 }
  0x22   :  { %545 = vmatmul.mubr.msk.f32.gmra.mrb[12].mxu0 %vm56_vm0, %v27_v30 }
  0x23   :  { %569 = vmatmul.mubr.msk.f32.gmra.mrb[12].mxu1 %vm56_vm0, %v43_v31  ;;  %547 = vmatprep.mubr.msk.f32.mxu0 %vm56_vm0, %v28_v32 }
  0x24   :  { %571 = vmatprep.mubr.msk.f32.mxu1 %vm56_vm0, %v44_v33 }
  0x26   :  { %548 = vmatmul.mubr.msk.f32.gmra.mrb[14].mxu0 %vm56_vm0, %v29_v34 }
  0x27   :  { %572 = vmatmul.mubr.msk.f32.gmra.mrb[14].mxu1 %vm56_vm0, %v45_v35 }
  0xdd   :  { %v528_v37 = vpop.f32.mrb[0].mxu0 }
  0xde   :  { %v552_v38 = vpop.f32.mrb[0].mxu1  ;;  %v229_v39 = vadd.f32 %v528_v37, %v742_v36  ;;  %v223_v41 = vpop.f32.mrb[1].mxu0 }
  0xdf   :  { %v309_v40 = vadd.f32 %v552_v38, %v742_v36  ;;  %v303_v42 = vpop.f32.mrb[1].mxu1  ;;  %v224_v43 = vadd.f32 %v742_v36, %v223_v41 }
  0xe0   :  { %v304_v44 = vadd.f32 %v742_v36, %v303_v42  ;;  %v383_v45 = vmax.f32 %v229_v39, 0.0 }
  0xe1   :  { %v399_v46 = vmax.f32 %v309_v40, 0.0  ;;  %v382_v47 = vmax.f32 %v224_v43, 0.0  ;;  %v531_v49 = vpop.f32.mrb[2].mxu0 }
  0xe2   :  { %v398_v48 = vmax.f32 %v304_v44, 0.0  ;;  %v555_v50 = vpop.f32.mrb[2].mxu1  ;;  %416 = vst.msk [vmem:[%s907_s3 + $0x8] sm:$0xff] %vm414_vm2, %v383_v45  ;;  %v239_v51 = vadd.f32 %v531_v49, %v742_v36  ;;  %v233_v53 = vpop.f32.mrb[3].mxu0 }
  0xe3   :  { %432 = vst.msk [vmem:[%s907_s3 + $0x88] sm:$0xff] %vm414_vm2, %v399_v46  ;;  %v319_v52 = vadd.f32 %v555_v50, %v742_v36  ;;  %v313_v54 = vpop.f32.mrb[3].mxu1  ;;  %415 = vst.msk [vmem:[%s907_s3] sm:$0xff] %vm414_vm2, %v382_v47  ;;  %v234_v55 = vadd.f32 %v742_v36, %v233_v53 }
  0xe4   :  { %431 = vst.msk [vmem:[%s907_s3 + $0x80] sm:$0xff] %vm414_vm2, %v398_v48  ;;  %v314_v56 = vadd.f32 %v742_v36, %v313_v54  ;;  %v385_v57 = vmax.f32 %v239_v51, 0.0 }
  0xe5   :  { %v401_v58 = vmax.f32 %v319_v52, 0.0  ;;  %v384_v59 = vmax.f32 %v234_v55, 0.0  ;;  %v534_v61 = vpop.f32.mrb[4].mxu0 }
  0xe6   :  { %v400_v60 = vmax.f32 %v314_v56, 0.0  ;;  %v558_v62 = vpop.f32.mrb[4].mxu1  ;;  %418 = vst.msk [vmem:[%s907_s3 + $0x18] sm:$0xff] %vm414_vm2, %v385_v57  ;;  %v249_v63 = vadd.f32 %v534_v61, %v742_v36  ;;  %v243_v1 = vpop.f32.mrb[5].mxu0 }
  0xe7   :  { %434 = vst.msk [vmem:[%s907_s3 + $0x98] sm:$0xff] %vm414_vm2, %v401_v58  ;;  %v329_v0 = vadd.f32 %v558_v62, %v742_v36  ;;  %v323_v2 = vpop.f32.mrb[5].mxu1  ;;  %417 = vst.msk [vmem:[%s907_s3 + $0x10] sm:$0xff] %vm414_vm2, %v384_v59  ;;  %v244_v3 = vadd.f32 %v742_v36, %v243_v1 }
  0xe8   :  { %433 = vst.msk [vmem:[%s907_s3 + $0x90] sm:$0xff] %vm414_vm2, %v400_v60  ;;  %v324_v4 = vadd.f32 %v742_v36, %v323_v2  ;;  %v387_v5 = vmax.f32 %v249_v63, 0.0 }
  0xe9   :  { %v403_v6 = vmax.f32 %v329_v0, 0.0  ;;  %v386_v7 = vmax.f32 %v244_v3, 0.0  ;;  %v537_v9 = vpop.f32.mrb[6].mxu0 }
  0xea   :  { %v402_v8 = vmax.f32 %v324_v4, 0.0  ;;  %v561_v10 = vpop.f32.mrb[6].mxu1  ;;  %420 = vst.msk [vmem:[%s907_s3 + $0x28] sm:$0xff] %vm414_vm2, %v387_v5  ;;  %v259_v11 = vadd.f32 %v537_v9, %v742_v36  ;;  %v253_v13 = vpop.f32.mrb[7].mxu0 }
  0xeb   :  { %436 = vst.msk [vmem:[%s907_s3 + $0xa8] sm:$0xff] %vm414_vm2, %v403_v6  ;;  %v339_v12 = vadd.f32 %v561_v10, %v742_v36  ;;  %v333_v14 = vpop.f32.mrb[7].mxu1  ;;  %419 = vst.msk [vmem:[%s907_s3 + $0x20] sm:$0xff] %vm414_vm2, %v386_v7  ;;  %v254_v15 = vadd.f32 %v742_v36, %v253_v13 }
  0xec   :  { %435 = vst.msk [vmem:[%s907_s3 + $0xa0] sm:$0xff] %vm414_vm2, %v402_v8  ;;  %v334_v16 = vadd.f32 %v742_v36, %v333_v14  ;;  %v389_v17 = vmax.f32 %v259_v11, 0.0 }
  0xed   :  { %v405_v18 = vmax.f32 %v339_v12, 0.0  ;;  %v388_v19 = vmax.f32 %v254_v15, 0.0  ;;  %v540_v21 = vpop.f32.mrb[8].mxu0 }
  0xee   :  { %v404_v20 = vmax.f32 %v334_v16, 0.0  ;;  %v564_v22 = vpop.f32.mrb[8].mxu1  ;;  %422 = vst.msk [vmem:[%s907_s3 + $0x38] sm:$0xff] %vm414_vm2, %v389_v17  ;;  %v269_v23 = vadd.f32 %v540_v21, %v742_v36  ;;  %v263_v25 = vpop.f32.mrb[9].mxu0 }
  0xef   :  { %438 = vst.msk [vmem:[%s907_s3 + $0xb8] sm:$0xff] %vm414_vm2, %v405_v18  ;;  %v349_v24 = vadd.f32 %v564_v22, %v742_v36  ;;  %v343_v26 = vpop.f32.mrb[9].mxu1  ;;  %421 = vst.msk [vmem:[%s907_s3 + $0x30] sm:$0xff] %vm414_vm2, %v388_v19  ;;  %v264_v27 = vadd.f32 %v742_v36, %v263_v25 }
  0xf0   :  { %437 = vst.msk [vmem:[%s907_s3 + $0xb0] sm:$0xff] %vm414_vm2, %v404_v20  ;;  %v344_v28 = vadd.f32 %v742_v36, %v343_v26  ;;  %v391_v29 = vmax.f32 %v269_v23, 0.0 }
  0xf1   :  { %v407_v30 = vmax.f32 %v349_v24, 0.0  ;;  %v390_v31 = vmax.f32 %v264_v27, 0.0  ;;  %v543_v33 = vpop.f32.mrb[10].mxu0 }
  0xf2   :  { %v406_v32 = vmax.f32 %v344_v28, 0.0  ;;  %v567_v34 = vpop.f32.mrb[10].mxu1  ;;  %424 = vst.msk [vmem:[%s907_s3 + $0x48] sm:$0xff] %vm414_vm2, %v391_v29  ;;  %v279_v35 = vadd.f32 %v543_v33, %v742_v36  ;;  %v273_v38 = vpop.f32.mrb[11].mxu0 }
  0xf3   :  { %440 = vst.msk [vmem:[%s907_s3 + $0xc8] sm:$0xff] %vm414_vm2, %v407_v30  ;;  %v359_v37 = vadd.f32 %v567_v34, %v742_v36  ;;  %v353_v39 = vpop.f32.mrb[11].mxu1  ;;  %423 = vst.msk [vmem:[%s907_s3 + $0x40] sm:$0xff] %vm414_vm2, %v390_v31  ;;  %v274_v40 = vadd.f32 %v742_v36, %v273_v38 }
  0xf4   :  { %439 = vst.msk [vmem:[%s907_s3 + $0xc0] sm:$0xff] %vm414_vm2, %v406_v32  ;;  %v354_v41 = vadd.f32 %v742_v36, %v353_v39  ;;  %v393_v42 = vmax.f32 %v279_v35, 0.0 }
  0xf5   :  { %v409_v43 = vmax.f32 %v359_v37, 0.0  ;;  %v392_v44 = vmax.f32 %v274_v40, 0.0  ;;  %v546_v46 = vpop.f32.mrb[12].mxu0 }
  0xf6   :  { %v408_v45 = vmax.f32 %v354_v41, 0.0  ;;  %v570_v47 = vpop.f32.mrb[12].mxu1  ;;  %426 = vst.msk [vmem:[%s907_s3 + $0x58] sm:$0xff] %vm414_vm2, %v393_v42  ;;  %v289_v48 = vadd.f32 %v546_v46, %v742_v36  ;;  %v283_v50 = vpop.f32.mrb[13].mxu0 }
  0xf7   :  { %442 = vst.msk [vmem:[%s907_s3 + $0xd8] sm:$0xff] %vm414_vm2, %v409_v43  ;;  %v369_v49 = vadd.f32 %v570_v47, %v742_v36  ;;  %v363_v51 = vpop.f32.mrb[13].mxu1  ;;  %425 = vst.msk [vmem:[%s907_s3 + $0x50] sm:$0xff] %vm414_vm2, %v392_v44  ;;  %v284_v52 = vadd.f32 %v742_v36, %v283_v50 }
  0xf8   :  { %441 = vst.msk [vmem:[%s907_s3 + $0xd0] sm:$0xff] %vm414_vm2, %v408_v45  ;;  %v364_v53 = vadd.f32 %v742_v36, %v363_v51  ;;  %v395_v54 = vmax.f32 %v289_v48, 0.0 }
  0xf9   :  { %v411_v55 = vmax.f32 %v369_v49, 0.0  ;;  %v394_v56 = vmax.f32 %v284_v52, 0.0  ;;  %v549_v58 = vpop.f32.mrb[14].mxu0 }
  0xfa   :  { %v410_v57 = vmax.f32 %v364_v53, 0.0  ;;  %v573_v59 = vpop.f32.mrb[14].mxu1  ;;  %428 = vst.msk [vmem:[%s907_s3 + $0x68] sm:$0xff] %vm414_vm2, %v395_v54  ;;  %v299_v60 = vadd.f32 %v549_v58, %v742_v36  ;;  %v293_v62 = vpop.f32.mrb[15].mxu0 }
  0xfb   :  { %444 = vst.msk [vmem:[%s907_s3 + $0xe8] sm:$0xff] %vm414_vm2, %v411_v55  ;;  %v379_v61 = vadd.f32 %v573_v59, %v742_v36  ;;  %v373_v63 = vpop.f32.mrb[15].mxu1  ;;  %427 = vst.msk [vmem:[%s907_s3 + $0x60] sm:$0xff] %vm414_vm2, %v394_v56  ;;  %v294_v0 = vadd.f32 %v742_v36, %v293_v62 }
  0xfc   :  { %443 = vst.msk [vmem:[%s907_s3 + $0xe0] sm:$0xff] %vm414_vm2, %v410_v57  ;;  %v374_v1 = vadd.f32 %v742_v36, %v373_v63  ;;  %v397_v2 = vmax.f32 %v299_v60, 0.0 }
  0xfd   :  { %v413_v3 = vmax.f32 %v379_v61, 0.0  ;;  %v396_v4 = vmax.f32 %v294_v0, 0.0 }
  0xfe   :  { %v412_v5 = vmax.f32 %v374_v1, 0.0  ;;  %430 = vst.msk [vmem:[%s907_s3 + $0x78] sm:$0xff] %vm414_vm2, %v397_v2 }
  0xff   :  { %446 = vst.msk [vmem:[%s907_s3 + $0xf8] sm:$0xff] %vm414_vm2, %v413_v3  ;;  %429 = vst.msk [vmem:[%s907_s3 + $0x70] sm:$0xff] %vm414_vm2, %v396_v4 }
 0x100   :  { %445 = vst.msk [vmem:[%s907_s3 + $0xf0] sm:$0xff] %vm414_vm2, %v412_v5 }

</bundles_post_ra>
